<compile_context>
chip_gen: v6e
topology: v6e:2x2x1
jax: 0.10.0
libtpu: 0.0.40
codegen_flags: <defaults>
</compile_context>

<pallas_src>
import jax
import jax.numpy as jnp
from jax.experimental import pallas as pl
from jax.experimental.pallas import tpu as pltpu


def _cdiv(a, b):
    return (a + b - 1) // b


def _round_up(n, m):
    return ((n + m - 1) // m) * m


def mlp_kernel(x_ref, w1_ref, b1_ref, w2_ref, b2_ref, w3_ref, b3_ref, o_ref):
    x = x_ref[...]                       # (tb, K)   f32
    w1 = w1_ref[...]                     # (K, 256)  f32
    k_in = w1.shape[0]                   # static (4)

    # fc1 + ReLU on the VPU: with K = 4 the MXU contraction dim would be ~3%
    # utilized, so do K rank-1 accumulations instead (static unroll).
    acc = x[:, 0:1] * w1[0:1, :]
    for k in range(1, k_in):
        acc = acc + x[:, k:k + 1] * w1[k:k + 1, :]
    h1 = jnp.maximum(acc + b1_ref[...], 0.0)           # (tb, 256) f32

    # fc2 + ReLU on the MXU with bf16 operands, f32 accumulation.
    h2 = jnp.dot(h1.astype(jnp.bfloat16), w2_ref[...],
                 preferred_element_type=jnp.float32)
    h2 = jnp.maximum(h2 + b2_ref[...], 0.0)            # (tb, 128) f32

    # fc3 (out_features == 1): VPU multiply + XLU lane reduce; scalar b3 from SMEM.
    logits = jnp.sum(h2 * w3_ref[...], axis=-1, keepdims=True) + b3_ref[0, 0]
    o_ref[...] = jax.nn.sigmoid(logits).astype(o_ref.dtype)   # (tb, 1)


def simple_nn_forward(x, params, *, block_batch=2048):
    """Fused forward pass. x: (batch, in_features) f32 -> (batch, 1) f32."""
    w1, b1, w2, b2, w3_row, b3 = params
    batch, in_features = x.shape
    h1_f = w1.shape[1]   # 256
    h2_f = w2.shape[1]   # 128

    # bf16 MXU operand for fc2 (single-pass matmul); biases / fc3 stay f32.
    w2_bf16 = w2.astype(jnp.bfloat16)

    # Batch tile: multiple of 8 sublanes, capped at block_batch, and (when the
    # batch allows it) at ~half the batch so the grid keeps >= 2 "parallel"
    # steps for v7x's two TensorCores.  No padding: Pallas masks the ragged
    # tail block of the grid.
    tb = min(block_batch, max(8, _round_up(_cdiv(batch, 2), 8)))
    grid = (_cdiv(batch, tb),)

    flops = 2 * batch * (in_features * h1_f + h1_f * h2_f + h2_f)
    bytes_accessed = (
        4 * batch * in_features                               # x
        + 4 * batch                                           # (batch, 1) output
        + 4 * (w1.size + b1.size + b2.size + w3_row.size + b3.size)
        + 2 * w2.size                                         # bf16 fc2 weight
    )

    out = pl.pallas_call(
        mlp_kernel,
        out_shape=jax.ShapeDtypeStruct((batch, 1), jnp.float32),
        grid=grid,
        in_specs=[
            pl.BlockSpec((tb, in_features), lambda i: (i, 0)),    # x (batch-tiled)
            pl.BlockSpec((in_features, h1_f), lambda i: (0, 0)),  # w1 (resident)
            pl.BlockSpec((1, h1_f), lambda i: (0, 0)),            # b1 (resident)
            pl.BlockSpec((h1_f, h2_f), lambda i: (0, 0)),         # w2 bf16 (resident)
            pl.BlockSpec((1, h2_f), lambda i: (0, 0)),            # b2 (resident)
            pl.BlockSpec((1, h2_f), lambda i: (0, 0)),            # w3 row (resident)
            pl.BlockSpec(memory_space=pltpu.MemorySpace.SMEM),    # b3 scalar
        ],
        out_specs=pl.BlockSpec((tb, 1), lambda i: (i, 0)),        # width-1 output
        compiler_params=pltpu.CompilerParams(
            dimension_semantics=("parallel",),     # shard batch tiles across TCs
            vmem_limit_bytes=32 * 1024 * 1024,
        ),
        cost_estimate=pl.CostEstimate(
            flops=flops,
            transcendentals=2 * batch,             # exp + reciprocal per sigmoid
            bytes_accessed=bytes_accessed,
        ),
    )(x, w1, b1, w2_bf16, b2, w3_row, b3)

    return out


def init_params(key, input_size):
    """Deterministic PyTorch-style (uniform +-1/sqrt(fan_in)) init."""
    ks = jax.random.split(key, 6)

    def linear(kw, kb, fan_in, fan_out):
        bound = 1.0 / jnp.sqrt(jnp.float32(fan_in))
        w = jax.random.uniform(kw, (fan_in, fan_out), jnp.float32, -bound, bound)
        b = jax.random.uniform(kb, (1, fan_out), jnp.float32, -bound, bound)
        return w, b

    w1, b1 = linear(ks[0], ks[1], input_size, 256)
    w2, b2 = linear(ks[2], ks[3], 256, 128)
    # fc3 weight stored as a (1, 128) row (used as multiply + lane-reduce).
    w3_row, b3 = linear(ks[4], ks[5], 128, 1)
    w3_row = w3_row.T            # (1, 128)
    b3 = b3.reshape(1, 1)        # scalar in a (1, 1) SMEM-friendly array
    return (w1, b1, w2, b2, w3_row, b3)


def reference_forward(x, params):
    w1, b1, w2, b2, w3_row, b3 = params
    h1 = jnp.maximum(x @ w1 + b1, 0.0)
    h2 = jnp.maximum(h1 @ w2 + b2, 0.0)
    logits = jnp.sum(h2 * w3_row, axis=-1, keepdims=True) + b3[0, 0]
    return jax.nn.sigmoid(logits)


if __name__ == "__main__":
    key = jax.random.PRNGKey(0)
    k_x, k_p, k_x2 = jax.random.split(key, 3)

    input_size = 4  # "4_gene" feature vector per sample
    params = init_params(k_p, input_size)

    # Small demo batch (single grid step).  Tolerance loosened vs a pure-f32
    # reference because fc2 runs with bf16 MXU operands.
    batch = 8
    x = jax.random.normal(k_x, (batch, input_size), jnp.float32)
    out = jax.block_until_ready(simple_nn_forward(x, params))
    ref = reference_forward(x, params)
    assert out.shape == (batch, 1)
    assert jnp.allclose(out, ref, atol=2e-2, rtol=2e-2)

    # Larger, non-multiple batch: exercises a multi-step grid and the ragged
    # (masked) tail block — no wrapper-side padding anymore.
    batch2 = 300
    x2 = jax.random.normal(k_x2, (batch2, input_size), jnp.float32)
    out2 = jax.block_until_ready(simple_nn_forward(x2, params, block_batch=128))
    ref2 = reference_forward(x2, params)
    assert out2.shape == (batch2, 1)
    assert jnp.allclose(out2, ref2, atol=2e-2, rtol=2e-2)

    print("KERNEL_OK")
</pallas_src>

<mosaic_0001>
module attributes {stable_mosaic.version = 11 : i64} {
  func.func @mlp_kernel(%arg0: i32, %arg1: memref<8x4xf32, #tpu.memory_space<vmem>>, %arg2: memref<4x256xf32, #tpu.memory_space<vmem>>, %arg3: memref<1x256xf32, #tpu.memory_space<vmem>>, %arg4: memref<256x128xbf16, #tpu.memory_space<vmem>>, %arg5: memref<1x128xf32, #tpu.memory_space<vmem>>, %arg6: memref<1x128xf32, #tpu.memory_space<vmem>>, %arg7: memref<1x1xf32, #tpu.memory_space<smem>>, %arg8: memref<8x1xf32, #tpu.memory_space<vmem>>) attributes {dimension_semantics = [#tpu.dimension_semantics<parallel>], iteration_bounds = array<i64: 1>, scalar_prefetch = 0 : i64, scratch_operands = 0 : i64, tpu.core_type = #tpu.core_type<tc>, window_params = [{transform_indices = @transform_0, window_bounds = array<i64: 8, 4>}, {pipeline_mode = #tpu.pipeline_mode<synchronous>, transform_indices = @transform_1, window_bounds = array<i64: 4, 256>}, {pipeline_mode = #tpu.pipeline_mode<synchronous>, transform_indices = @transform_2, window_bounds = array<i64: 1, 256>}, {pipeline_mode = #tpu.pipeline_mode<synchronous>, transform_indices = @transform_3, window_bounds = array<i64: 256, 128>}, {pipeline_mode = #tpu.pipeline_mode<synchronous>, transform_indices = @transform_4, window_bounds = array<i64: 1, 128>}, {pipeline_mode = #tpu.pipeline_mode<synchronous>, transform_indices = @transform_5, window_bounds = array<i64: 1, 128>}, {transform_indices = @transform_6, window_bounds = array<i64: 1, 1>}, {transform_indices = @transform_7, window_bounds = array<i64: 8, 1>}]} {
    %c0 = arith.constant 0 : index
    %c0_0 = arith.constant 0 : index
    %0 = vector.load %arg1[%c0, %c0_0] : memref<8x4xf32, #tpu.memory_space<vmem>>, vector<8x4xf32>
    %c0_1 = arith.constant 0 : index
    %c0_2 = arith.constant 0 : index
    %1 = vector.load %arg2[%c0_1, %c0_2] : memref<4x256xf32, #tpu.memory_space<vmem>>, vector<4x256xf32>
    %2 = vector.extract_strided_slice %0 {offsets = [0, 0], sizes = [8, 1], strides = [1, 1]} : vector<8x4xf32> to vector<8x1xf32>
    %3 = vector.extract_strided_slice %1 {offsets = [0, 0], sizes = [1, 256], strides = [1, 1]} : vector<4x256xf32> to vector<1x256xf32>
    %4 = vector.broadcast %2 : vector<8x1xf32> to vector<8x256xf32>
    %5 = vector.broadcast %3 : vector<1x256xf32> to vector<8x256xf32>
    %6 = arith.mulf %4, %5 : vector<8x256xf32>
    %7 = vector.extract_strided_slice %0 {offsets = [0, 1], sizes = [8, 1], strides = [1, 1]} : vector<8x4xf32> to vector<8x1xf32>
    %8 = vector.extract_strided_slice %1 {offsets = [1, 0], sizes = [1, 256], strides = [1, 1]} : vector<4x256xf32> to vector<1x256xf32>
    %9 = vector.broadcast %7 : vector<8x1xf32> to vector<8x256xf32>
    %10 = vector.broadcast %8 : vector<1x256xf32> to vector<8x256xf32>
    %11 = arith.mulf %9, %10 : vector<8x256xf32>
    %12 = arith.addf %6, %11 : vector<8x256xf32>
    %13 = vector.extract_strided_slice %0 {offsets = [0, 2], sizes = [8, 1], strides = [1, 1]} : vector<8x4xf32> to vector<8x1xf32>
    %14 = vector.extract_strided_slice %1 {offsets = [2, 0], sizes = [1, 256], strides = [1, 1]} : vector<4x256xf32> to vector<1x256xf32>
    %15 = vector.broadcast %13 : vector<8x1xf32> to vector<8x256xf32>
    %16 = vector.broadcast %14 : vector<1x256xf32> to vector<8x256xf32>
    %17 = arith.mulf %15, %16 : vector<8x256xf32>
    %18 = arith.addf %12, %17 : vector<8x256xf32>
    %19 = vector.extract_strided_slice %0 {offsets = [0, 3], sizes = [8, 1], strides = [1, 1]} : vector<8x4xf32> to vector<8x1xf32>
    %20 = vector.extract_strided_slice %1 {offsets = [3, 0], sizes = [1, 256], strides = [1, 1]} : vector<4x256xf32> to vector<1x256xf32>
    %21 = vector.broadcast %19 : vector<8x1xf32> to vector<8x256xf32>
    %22 = vector.broadcast %20 : vector<1x256xf32> to vector<8x256xf32>
    %23 = arith.mulf %21, %22 : vector<8x256xf32>
    %24 = arith.addf %18, %23 : vector<8x256xf32>
    %c0_3 = arith.constant 0 : index
    %c0_4 = arith.constant 0 : index
    %25 = vector.load %arg3[%c0_3, %c0_4] : memref<1x256xf32, #tpu.memory_space<vmem>>, vector<1x256xf32>
    %26 = vector.broadcast %25 : vector<1x256xf32> to vector<8x256xf32>
    %27 = arith.addf %24, %26 : vector<8x256xf32>
    %cst = arith.constant 0.000000e+00 : f32
    %28 = vector.broadcast %cst : f32 to vector<8x256xf32>
    %29 = arith.maximumf %27, %28 : vector<8x256xf32>
    %30 = arith.truncf %29 : vector<8x256xf32> to vector<8x256xbf16>
    %c0_5 = arith.constant 0 : index
    %c0_6 = arith.constant 0 : index
    %31 = vector.load %arg4[%c0_5, %c0_6] : memref<256x128xbf16, #tpu.memory_space<vmem>>, vector<256x128xbf16>
    %cst_7 = arith.constant dense<0.000000e+00> : vector<8x128xf32>
    %32 = tpu.matmul %30, %31, %cst_7 {dimension_numbers = #tpu.dot_dimension_numbers<[1], [0], [0], [1], [0, 0, 1, 1], [], []>} : vector<8x256xbf16>, vector<256x128xbf16>, vector<8x128xf32> -> vector<8x128xf32>
    %c0_8 = arith.constant 0 : index
    %c0_9 = arith.constant 0 : index
    %33 = vector.load %arg5[%c0_8, %c0_9] : memref<1x128xf32, #tpu.memory_space<vmem>>, vector<1x128xf32>
    %34 = vector.broadcast %33 : vector<1x128xf32> to vector<8x128xf32>
    %35 = arith.addf %32, %34 : vector<8x128xf32>
    %cst_10 = arith.constant 0.000000e+00 : f32
    %36 = vector.broadcast %cst_10 : f32 to vector<8x128xf32>
    %37 = arith.maximumf %35, %36 : vector<8x128xf32>
    %c0_11 = arith.constant 0 : index
    %c0_12 = arith.constant 0 : index
    %38 = vector.load %arg6[%c0_11, %c0_12] : memref<1x128xf32, #tpu.memory_space<vmem>>, vector<1x128xf32>
    %39 = vector.broadcast %38 : vector<1x128xf32> to vector<8x128xf32>
    %40 = arith.mulf %37, %39 : vector<8x128xf32>
    %cst_13 = arith.constant dense<0.000000e+00> : vector<8xf32>
    %41 = vector.multi_reduction <add>, %40, %cst_13 [1] : vector<8x128xf32> to vector<8xf32>
    %42 = vector.shape_cast %41 : vector<8xf32> to vector<8x1xf32>
    %c0_14 = arith.constant 0 : index
    %c0_15 = arith.constant 0 : index
    %43 = memref.load %arg7[%c0_14, %c0_15] : memref<1x1xf32, #tpu.memory_space<smem>>
    %44 = vector.broadcast %43 : f32 to vector<8x1xf32>
    %45 = arith.addf %42, %44 : vector<8x1xf32>
    %46 = arith.negf %45 : vector<8x1xf32>
    %47 = math.exp %46 : vector<8x1xf32>
    %cst_16 = arith.constant 1.000000e+00 : f32
    %48 = vector.broadcast %cst_16 : f32 to vector<8x1xf32>
    %49 = arith.addf %48, %47 : vector<8x1xf32>
    %50 = arith.divf %48, %49 : vector<8x1xf32>
    %c0_17 = arith.constant 0 : index
    %c0_18 = arith.constant 0 : index
    %51 = vector.load %arg8[%c0_17, %c0_18] : memref<8x1xf32, #tpu.memory_space<vmem>>, vector<8x1xf32>
    tpu.vector_store %arg8[%c0_17, %c0_18], %50 {strides = array<i32>} : memref<8x1xf32, #tpu.memory_space<vmem>>, vector<8x1xf32>,
    return
  }
  func.func @transform_0(%arg0: i32) -> (i32, i32) {
    %c0_i32 = arith.constant 0 : i32
    %c0_i32_0 = arith.constant 0 : i32
    return %arg0, %c0_i32 : i32, i32
  }
  func.func @transform_1(%arg0: i32) -> (i32, i32) {
    %c0_i32 = arith.constant 0 : i32
    %c0_i32_0 = arith.constant 0 : i32
    %c0_i32_1 = arith.constant 0 : i32
    return %c0_i32, %c0_i32_0 : i32, i32
  }
  func.func @transform_2(%arg0: i32) -> (i32, i32) {
    %c0_i32 = arith.constant 0 : i32
    %c0_i32_0 = arith.constant 0 : i32
    %c0_i32_1 = arith.constant 0 : i32
    return %c0_i32, %c0_i32_0 : i32, i32
  }
  func.func @transform_3(%arg0: i32) -> (i32, i32) {
    %c0_i32 = arith.constant 0 : i32
    %c0_i32_0 = arith.constant 0 : i32
    %c0_i32_1 = arith.constant 0 : i32
    return %c0_i32, %c0_i32_0 : i32, i32
  }
  func.func @transform_4(%arg0: i32) -> (i32, i32) {
    %c0_i32 = arith.constant 0 : i32
    %c0_i32_0 = arith.constant 0 : i32
    %c0_i32_1 = arith.constant 0 : i32
    return %c0_i32, %c0_i32_0 : i32, i32
  }
  func.func @transform_5(%arg0: i32) -> (i32, i32) {
    %c0_i32 = arith.constant 0 : i32
    %c0_i32_0 = arith.constant 0 : i32
    %c0_i32_1 = arith.constant 0 : i32
    return %c0_i32, %c0_i32_0 : i32, i32
  }
  func.func @transform_6(%arg0: i32) -> (i32, i32) {
    %c0_i32 = arith.constant 0 : i32
    %c0_i32_0 = arith.constant 0 : i32
    %c0_i32_1 = arith.constant 0 : i32
    return %c0_i32, %c0_i32_0 : i32, i32
  }
  func.func @transform_7(%arg0: i32) -> (i32, i32) {
    %c0_i32 = arith.constant 0 : i32
    %c0_i32_0 = arith.constant 0 : i32
    return %arg0, %c0_i32 : i32, i32
  }
}

</mosaic_0001>

<bundles_post_ra>
// kernel: tpu_custom_call.1
= control target key start
LH: loop header
LB: loop body
LE: loop exit
PB: predicated region body
PF: predicated region fallthrough
CT: control target
= control target key end

     0   :  { %13 = vsyncpa [#allocation4], 0  ;;  %s463_s24 = smov [#allocation3]   ;;  %s534_s0 = inlined_call_operand.vmem [shape: f32[8,4], index: 0, kind: input, shape index: {}]   ;;  %s535_s1 = inlined_call_operand.vmem [shape: f32[4,256], index: 1, kind: input, shape index: {}]   ;;  %s536_s2 = inlined_call_operand.vmem [shape: f32[1,256], index: 2, kind: input, shape index: {}]   ;;  %s537_s3 = inlined_call_operand.hbm [shape: bf16[256,128], index: 3, kind: input, shape index: {}]   ;;  %s538_s4 = inlined_call_operand.vmem [shape: f32[1,128], index: 4, kind: input, shape index: {}]   ;;  %s539_s5 = inlined_call_operand.vmem [shape: f32[1,128], index: 5, kind: input, shape index: {}]   ;;  %s540_s6 = inlined_call_operand.<no memory space> [shape: f32[1,1], index: 6, kind: input, shape index: {}]   ;;  %s541_s7 = inlined_call_operand.vmem [shape: f32[8,1], index: 7, kind: output, shape index: {}]  }
   0x1   :  { %s25_s25 = sshll.u32 %s463_s24, 4  ;;  %s26_s25 = int_to_ptr.vmem [resolvable:$true] %s25_s25 }
   0x2   :  { %s449_s26 = scalar_lea.vmem %s26_s25, 2048  ;;  %p454_p1 = scmp.lt.s32.totalorder %s26_s25, %s26_s25 }
   0x3   :  { %p450_p0 = scmp.ne.s32.totalorder %s26_s25, %s449_s26  ;;  %p455_p2 = scmp.lt.s32.totalorder %s449_s26, %s449_s26 }
   0x5   :  { %p456_p3 = por %p455_p2, %p454_p1 }
   0x7   :  { %p457_p4 = pnand %p456_p3, %p450_p0 }
   0x9   :  { %460 = shalt.err (!%p457_p4)
}
   0xa   :  { %s464_s27 = smov 64   ;;  %s465_s28 = smov 4  }
   0xb   :  { %31 = dma.hbm_to_vmem [thread:$0]  %s537_s3, 2048, %s26_s25, [#allocation4], %s464_s27, %s464_s27, %s465_s28  }
   0xc   :  { %461 = dma.done.wait [#allocation4], 2048  }
   0xd   :  { %462 = vsyncadd [#allocation4], 4294965248  ;;  %v466_v0 = vmov 0   ;;  %v467_v1 = vmov 2   ;;  %v42_v2 = vld [vmem:[%s534_s0] sm:$0xff]  ;;  %v421_v3 = vld [vmem:[#allocation3 + $0x78] sm:$0xff]   ;;  %v50_v21 = vlaneseq }
   0xe   :  { %416 = vset.pattern.permute.xlu0 %v466_v0  ;;  %418 = vset.pattern.permute.xlu1 %v467_v1  ;;  %v422_v4 = vld [vmem:[#allocation3 + $0x38] sm:$0xff]   ;;  %v423_v5 = vld [vmem:[#allocation3 + $0x70] sm:$0xff]   ;;  %v468_v7 = vmov 1   ;;  %v469_v8 = vmov 3   ;;  %v425_v9 = vld [vmem:[#allocation3 + $0x68] sm:$0xff]   ;;  %vm361_vm0 = vcmask 7168  }
   0xf   :  { %46 = vperm.xlu0 %416, %v42_v2   ;;  %97 = vperm.xlu1 %418, %v42_v2   ;;  %v424_v6 = vld [vmem:[#allocation3 + $0x30] sm:$0xff]   ;;  %v426_v10 = vld [vmem:[#allocation3 + $0x28] sm:$0xff]   ;;  %v427_v11 = vld [vmem:[#allocation3 + $0x60] sm:$0xff]   ;;  %v51_v22 = vshrl.u32 %v50_v21, 7  ;;  %v353_v21 = vstv %s540_s6 }
  0x10   :  { %387 = vmatprep.subr.bf16.mxu0 %v421_v3  ;;  %v428_v12 = vld [vmem:[#allocation3 + $0x20] sm:$0xff]   ;;  %v429_v13 = vld [vmem:[#allocation3 + $0x58] sm:$0xff]   ;;  %v431_v15 = vld [vmem:[#allocation3 + $0x50] sm:$0xff]  }
  0x11   :  { %388 = vmatpush3.bf16.msra.mxu0 %v422_v4  ;;  %v430_v14 = vld [vmem:[#allocation3 + $0x18] sm:$0xff]   ;;  %v432_v16 = vld [vmem:[#allocation3 + $0x10] sm:$0xff]   ;;  %v433_v17 = vld [vmem:[#allocation3 + $0x48] sm:$0xff]   ;;  %v52_v23 = vsub.s32 0, %v51_v22  ;;  %v56_v24 = vsub.s32 4, %v51_v22  ;;  %v76_v25 = vsub.s32 1, %v51_v22 }
  0x12   :  { %389 = vmatprep.subr.bf16.mxu0 %v423_v5  ;;  %v434_v18 = vld [vmem:[#allocation3 + $0x8] sm:$0xff]   ;;  %v435_v19 = vld [vmem:[#allocation3 + $0x40] sm:$0xff]   ;;  %v80_v26 = vsub.s32 5, %v51_v22  ;;  %v102_v28 = vsub.s32 2, %v51_v22  ;;  %v106_v29 = vsub.s32 6, %v51_v22  ;;  %v128_v30 = vsub.s32 3, %v51_v22 }
  0x13   :  { %417 = vset.pattern.permute.xlu0 %v468_v7  ;;  %419 = vset.pattern.permute.xlu1 %v469_v8  ;;  %v436_v20 = vld [vmem:[#allocation3] sm:$0xff]   ;;  %v132_v31 = vsub.s32 7, %v51_v22 }
  0x14   :  { %71 = vperm.xlu0 %417, %v42_v2   ;;  %123 = vperm.xlu1 %419, %v42_v2   ;;  %v43_v27 = vld [vmem:[%s535_s1] sm:$0xff] }
  0x15   :  { %390 = vmatpush3.bf16.msra.mxu0 %v424_v6  ;;  %v53_v32 = vrot.slane %v43_v27, %v52_v23  ;;  %v57_v33 = vrot.slane %v43_v27, %v56_v24  ;;  %v77_v34 = vrot.slane %v43_v27, %v76_v25  ;;  %v81_v35 = vrot.slane %v43_v27, %v80_v26  ;;  %v148_v58 = vld [vmem:[%s536_s2] sm:$0x3] }
  0x16   :  { %391 = vmatprep.subr.bf16.mxu0 %v425_v9  ;;  %v103_v36 = vrot.slane %v43_v27, %v102_v28  ;;  %v107_v37 = vrot.slane %v43_v27, %v106_v29  ;;  %v129_v40 = vrot.slane %v43_v27, %v128_v30  ;;  %v133_v41 = vrot.slane %v43_v27, %v132_v31 }
  0x17   :  { %v63_v42 = vrot.slane %v53_v32, %v52_v23  ;;  %v67_v43 = vrot.slane %v57_v33, %v52_v23  ;;  %v87_v44 = vrot.slane %v77_v34, %v76_v25  ;;  %v91_v45 = vrot.slane %v81_v35, %v76_v25 }
  0x18   :  { %420 = vset.pattern.permute.xlu0 %v469_v8  ;;  %v113_v46 = vrot.slane %v103_v36, %v102_v28  ;;  %v117_v47 = vrot.slane %v107_v37, %v102_v28  ;;  %v139_v48 = vrot.slane %v129_v40, %v128_v30  ;;  %v143_v49 = vrot.slane %v133_v41, %v128_v30 }
  0x19   :  { %392 = vmatpush3.bf16.msra.mxu0 %v426_v10  ;;  %v153_v1 = vrot.slane %v148_v58, %v52_v23  ;;  %v157_v2 = vrot.slane %v148_v58, %v76_v25 }
  0x1a   :  { %393 = vmatprep.subr.bf16.mxu0 %v427_v11 }
  0x1d   :  { %394 = vmatpush3.bf16.msra.mxu0 %v428_v12  ;;  %v368_v12 = vld [vmem:[%s538_s4] ss:$0 sm:$0xff] }
  0x1e   :  { %395 = vmatprep.subr.bf16.mxu0 %v429_v13 }
  0x21   :  { %396 = vmatpush3.bf16.msra.mxu0 %v430_v14 }
  0x22   :  { %397 = vmatprep.subr.bf16.mxu0 %v431_v15 }
  0x25   :  { %398 = vmatpush3.bf16.msra.mxu0 %v432_v16 }
  0x26   :  { %399 = vmatprep.subr.bf16.mxu0 %v433_v17 }
  0x29   :  { %400 = vmatpush3.bf16.msra.mxu0 %v434_v18  ;;  %v385_v18 = vld [vmem:[%s539_s5] ss:$0 sm:$0xff] }
  0x2a   :  { %401 = vmatprep.subr.bf16.mxu0 %v435_v19 }
  0x2d   :  { %402 = vmatpush3.bf16.msra.mxu0 %v436_v20 }
  0x8a   :  { %v47_v38 = vpop.permute.xlu0 %46  ;;  %v98_v39 = vpop.permute.xlu1 %97 }
  0x8b   :  { %v68_v52 = vmul.f32 %v63_v42, %v47_v38  ;;  %v69_v53 = vmul.f32 %v67_v43, %v47_v38  ;;  %v118_v56 = vmul.f32 %v113_v46, %v98_v39  ;;  %v119_v57 = vmul.f32 %v117_v47, %v98_v39 }
  0x8f   :  { %v72_v50 = vpop.permute.xlu0 %71  ;;  %v124_v51 = vpop.permute.xlu1 %123 }
  0x90   :  { %v92_v54 = vmul.f32 %v87_v44, %v72_v50  ;;  %v93_v55 = vmul.f32 %v91_v45, %v72_v50  ;;  %v144_v61 = vmul.f32 %v139_v48, %v124_v51  ;;  %v145_v62 = vmul.f32 %v143_v49, %v124_v51 }
  0x92   :  { %v94_v59 = vadd.f32 %v92_v54, %v68_v52  ;;  %v95_v60 = vadd.f32 %v93_v55, %v69_v53 }
  0x94   :  { %v120_v63 = vadd.f32 %v118_v56, %v94_v59  ;;  %v121_v0 = vadd.f32 %v119_v57, %v95_v60 }
  0x96   :  { %v146_v3 = vadd.f32 %v144_v61, %v120_v63  ;;  %v147_v4 = vadd.f32 %v145_v62, %v121_v0 }
  0x98   :  { %v161_v5 = vadd.f32 %v157_v2, %v147_v4  ;;  %v160_v6 = vadd.f32 %v153_v1, %v146_v3 }
  0x9a   :  { %v163_v7 = vmax.f32 %v161_v5, 0.0  ;;  %v162_v8 = vmax.f32 %v160_v6, 0.0 }
  0x9c   :  { %v165_v9 = vpack.c.bf16 %v163_v7, %v163_v7  ;;  %v164_v10 = vpack.c.bf16 %v162_v8, %v162_v8 }
  0x9e   :  { %333 = vmatprep.mubr.bf16.mxu0 %v165_v9 }
  0x9f   :  { %334 = vmatmul.mubr.bf16.vlgmr.msra.gmra.mxu0 %v164_v10 }
 0x15f   :  { %v403_v11 = vpop.f32.mrf.mxu0 }
 0x161   :  { %v404_v13 = vpop.f32.mrf.mxu0 }
 0x162   :  { %v405_v14 = vadd.f32 %v404_v13, %v403_v11 }
 0x163   :  { %v406_v15 = vpop.f32.mrf.mxu0 }
 0x164   :  { %v336_v16 = vadd.f32 %v405_v14, %v368_v12 }
 0x165   :  { %v407_v17 = vpop.f32.mrf.mxu0 }
 0x166   :  { %v341_v19 = vmax.f32 %v336_v16, 0.0 }
 0x168   :  { %v349_v20 = vmul.f32 %v385_v18, %v341_v19 }
 0x16a   :  { %350 = vadd.xlane.f32.xlu1 %v349_v20 }
 0x1f3   :  { %v351_v22 = vpop.xlane.xlu1 %350 }
 0x1f4   :  { %v354_v23 = vadd.f32 %v353_v21, %v351_v22 }
 0x1f6   :  { %v386_v24 = vmul.f32 -1.442695, %v354_v23 }
 0x1f8   :  { %437 = vpow2.f32 %v386_v24 }
 0x205   :  { %v438_v25 = vpop.eup %437 }
 0x206   :  { %v358_v26 = vadd.f32 1.0, %v438_v25 }
 0x208   :  { %439 = vrcp.f32 %v358_v26 }
 0x215   :  { %v440_v27 = vpop.eup %439 }
 0x216   :  { %362 = vst.msk [vmem:[%s541_s7] sm:$0xff] %vm361_vm0, %v440_v27 }
 0x217   :  { %367 = vsyncpa [#allocation4], 1 }

</bundles_post_ra>
